<compile_context>
chip_gen: v7x
topology: tpu7x:2x2x1
jax: 0.10.0
libtpu: 0.0.40
codegen_flags: <defaults>
</compile_context>

<pallas_src>
import functools

import jax
import jax.numpy as jnp
from jax import lax
from jax.experimental import pallas as pl
from jax.experimental.pallas import tpu as pltpu

BN_EPS = 1e-5


# ----------------------------- roll direction probe ----------------------------------

@functools.lru_cache(maxsize=None)
def _roll_matches_jnp():
    """True iff pltpu.roll(x, s, axis) == jnp.roll(x, s, axis) on this backend."""
    def probe(x_ref, o_ref):
        o_ref[...] = pltpu.roll(x_ref[...], 1, 1)

    x = jnp.broadcast_to(jnp.arange(128, dtype=jnp.float32), (8, 128))
    y = pl.pallas_call(probe, out_shape=jax.ShapeDtypeStruct((8, 128), jnp.float32))(x)
    # jnp.roll convention: element 0 lands at index 1 after a +1 roll.
    return bool(y[0, 1] == 0.0)


# ------------------------------ fused Pallas kernel -----------------------------------

def _bottle_nonlocal_kernel(l_ref, w1_ref, wd_ref, w3_ref, cp_ref, o_ref,
                            *, H, W, c_r, nl_s, scale, roll_is_jnp):
    # Per grid step (nb batches, channels-first, spatial flattened on the lane axis):
    #   l_ref  : (nb, C+1, HW)  input l; channel row C is all-ones (for bias folding)
    #   w1_ref : (M, C+1)       1x1 conv1 weights (BN1 scale folded) | b1
    #   wd_ref : (M, 10)        dw3x3 taps (BN2 scale folded)        | b2
    #   w3_ref : (C, M)         1x1 conv3 weights (BN3 scale folded)
    #   cp_ref : (C+1, C)       [I_C ; b3]  -> folds "+l" and "+b3" into a tiny matmul
    #   o_ref  : (nb, C, HW)    output (NCHW slab, lane-dense)
    nb = l_ref.shape[0]
    Cp1 = l_ref.shape[1]
    C = Cp1 - 1
    M = w1_ref.shape[0]
    HW = H * W
    L = nb * HW

    # ---- position bookkeeping on the lane axis --------------------------------------
    pos_hw = lax.broadcasted_iota(jnp.int32, (1, HW), 1)
    sel = (((pos_hw // W) % nl_s) == 0) & (((pos_hw % W) % nl_s) == 0)   # g positions

    posL = lax.broadcasted_iota(jnp.int32, (1, L), 1) % HW               # per-image pos
    ysL = posL // W
    xsL = posL % W

    # tiny (C+1, C+1) fixup masks for the affinity matrix
    ri = lax.broadcasted_iota(jnp.int32, (Cp1, Cp1), 0)
    ci = lax.broadcasted_iota(jnp.int32, (Cp1, Cp1), 1)
    keep = (ri < c_r) & (ci < C)        # theta/phi channel cut + drop ones-row column
    ones_fix = (ri == C) & (ci == C)    # makes the f-matmul reproduce the ones row

    cp = cp_ref[...]                    # (C+1, C) = [I_C ; b3]

    # ---- lightweight non-local (channel-channel form), per batch --------------------
    f_parts, r_parts = [], []
    for n in range(nb):
        ln = l_ref[n]                                   # (C+1, HW); row C == 1
        lgn = jnp.where(sel, ln, 0.0)                   # masked copy == subsampled g
        # A[i, j] = sum_s phi[i, s] * g[j, s]  (gram over subsampled positions)
        A = lax.dot_general(lgn, lgn, (((1,), (1,)), ((), ())),
                            preferred_element_type=jnp.float32)          # (C+1, C+1)
        A = jnp.where(keep, A * scale, 0.0)             # rows>=c_r / ones col -> 0; f/H*W
        A = jnp.where(ones_fix, 1.0, A)                 # f_aug row C == ones
        B = A[:, :C] + cp                               # + identity (->+l) and b3 row
        # f_aug[j, p] = sum_i A[i, j] * theta[i, p]  (plus the ones row)
        f_parts.append(lax.dot_general(A, ln, (((0,), (0,)), ((), ())),
                                       preferred_element_type=jnp.float32))   # (C+1, HW)
        # resid[j, p] = f[j, p] + l[j, p] + b3[j]
        r_parts.append(lax.dot_general(B, ln, (((0,), (0,)), ((), ())),
                                       preferred_element_type=jnp.float32))   # (C, HW)
    f_aug = f_parts[0] if nb == 1 else jnp.concatenate(f_parts, axis=1)        # (C+1, L)
    resid = r_parts[0] if nb == 1 else jnp.concatenate(r_parts, axis=1)        # (C, L)

    # ---- conv1: 1x1 (BN folded) + relu6; b1 rides in w1's last column ---------------
    m = jnp.dot(w1_ref[...], f_aug, preferred_element_type=jnp.float32)        # (M, L)
    m = jnp.clip(m, 0.0, 6.0)

    # ---- dwconv2: depthwise 3x3 (stride 1, pad 1) + BN + relu6 ----------------------
    # Each tap is an XLU lane roll of m; wrap-around values land only in positions the
    # iota boundary masks zero (batch boundaries are masked exactly like image edges).
    wd = wd_ref[...]                                                            # (M, 10)
    acc = jnp.broadcast_to(wd[:, 9:10], (M, L))          # start from folded BN2 bias b2
    for k in range(9):
        dy, dx = k // 3 - 1, k % 3 - 1
        delta = dy * W + dx
        if delta == 0:
            tap = m
        else:
            shift = (-delta) % L if roll_is_jnp else delta % L
            tap = pltpu.roll(m, shift, 1)
        conds = []
        if dy < 0:
            conds.append(ysL >= -dy)
        if dy > 0:
            conds.append(ysL < H - dy)
        if dx < 0:
            conds.append(xsL >= -dx)
        if dx > 0:
            conds.append(xsL < W - dx)
        if conds:
            valid = conds[0]
            for extra in conds[1:]:
                valid = valid & extra
            tap = jnp.where(valid, tap, 0.0)
        acc = acc + tap * wd[:, k:k + 1]
    d = jnp.clip(acc, 0.0, 6.0)                                                 # (M, L)

    # ---- conv3: 1x1 (BN folded); b3, "+f", "+l" already folded into `resid` ---------
    y = jnp.dot(w3_ref[...], d, preferred_element_type=jnp.float32)             # (C, L)
    out = y + resid
    if nb == 1:
        o_ref[0] = out
    else:
        for n in range(nb):
            o_ref[n] = out[:, n * HW:(n + 1) * HW]


# ------------------------------ parameters / wrapper ----------------------------------

def fold_bn(gamma, beta, mean, var):
    s = gamma / jnp.sqrt(var + BN_EPS)
    return s, beta - mean * s


def init_params(key, n_feature):
    C = n_feature
    M = 6 * C   # Bottleneck expansion_factor = 6
    ks = jax.random.split(key, 15)
    u = lambda k, shp: jax.random.uniform(k, shp, jnp.float32, 0.5, 1.5)
    n = lambda k, shp, sc=0.1: sc * jax.random.normal(k, shp, jnp.float32)
    return {
        # conv1: 1x1, C -> M  (PyTorch OIHW layout)
        'w1': n(ks[0], (M, C, 1, 1)),
        'bn1_gamma': u(ks[1], (M,)), 'bn1_beta': n(ks[2], (M,)),
        'bn1_mean': n(ks[3], (M,)), 'bn1_var': u(ks[4], (M,)),
        # dwconv2: 3x3 depthwise on M channels
        'wd': n(ks[5], (M, 1, 3, 3)),
        'bn2_gamma': u(ks[6], (M,)), 'bn2_beta': n(ks[7], (M,)),
        'bn2_mean': n(ks[8], (M,)), 'bn2_var': u(ks[9], (M,)),
        # conv3: 1x1, M -> C
        'w3': n(ks[10], (C, M, 1, 1)),
        'bn3_gamma': u(ks[11], (C,)), 'bn3_beta': n(ks[12], (C,)),
        'bn3_mean': n(ks[13], (C,)), 'bn3_var': u(ks[14], (C,)),
    }


def bottle_nonlocal_forward(l_nchw, p, nl_c, nl_s, batch_tile=None):
    N, C, H, W = l_nchw.shape
    HW = H * W
    M = 6 * C                               # Bottleneck expansion_factor = 6
    c_r = int(nl_c * C)
    if c_r < 1:
        raise ValueError("nl_c * n_feature must be >= 1 for the non-local branch")
    if batch_tile is None:
        # Default: two grid steps ("parallel") so both v7x TensorCores get work.
        # On v5e/v6e prefer batch_tile=N (single fat step) to amortize the ~0.35us
        # per-grid-step pipeline cost.
        batch_tile = N // 2 if (N % 2 == 0 and N >= 2) else 1
    if N % batch_tile != 0:
        raise ValueError("batch_tile must divide N")
    nb = batch_tile

    # Channels-first slab with an extra all-ones channel row (feeds the bias folding).
    x = l_nchw.astype(jnp.float32).reshape(N, C, HW)
    l_aug = jnp.concatenate([x, jnp.ones((N, 1, HW), jnp.float32)], axis=1)  # (N,C+1,HW)

    # Fold BN scales into conv weights; b1 becomes an extra w1 column (consumed via the
    # ones row), b2 rides with the dw taps, b3 + the two residual adds become a constant
    # (C+1, C) matrix added to the tiny affinity matrix inside the kernel.
    s1, b1 = fold_bn(p['bn1_gamma'], p['bn1_beta'], p['bn1_mean'], p['bn1_var'])
    w1_aug = jnp.concatenate([p['w1'][:, :, 0, 0] * s1[:, None], b1[:, None]],
                             axis=1)                                          # (M, C+1)
    s2, b2 = fold_bn(p['bn2_gamma'], p['bn2_beta'], p['bn2_mean'], p['bn2_var'])
    wd_aug = jnp.concatenate([p['wd'][:, 0].reshape(M, 9) * s2[:, None], b2[:, None]],
                             axis=1)                                          # (M, 10)
    s3, b3 = fold_bn(p['bn3_gamma'], p['bn3_beta'], p['bn3_mean'], p['bn3_var'])
    w3f = p['w3'][:, :, 0, 0] * s3[:, None]                                   # (C, M)
    cp = jnp.concatenate([jnp.eye(C, dtype=jnp.float32), b3[None, :]], axis=0)  # (C+1, C)

    kernel = functools.partial(
        _bottle_nonlocal_kernel, H=H, W=W, c_r=c_r, nl_s=nl_s,
        scale=float(W) / float(H),       # reference computes `f = f / H * W` == f*(W/H)
        roll_is_jnp=_roll_matches_jnp())

    # TODO(synk): for much larger H*W, add a spatial tile on the lane axis and set
    # pltpu.CompilerParams(vmem_limit_bytes=...) sized against v7x's 64 MiB physical
    # VMEM (keep the live set <= ~24-28 MiB incl. double-buffered I/O), not v6e's 128.
    out = pl.pallas_call(
        kernel,
        out_shape=jax.ShapeDtypeStruct((N, C, HW), jnp.float32),
        grid=(N // nb,),
        in_specs=[
            pl.BlockSpec((nb, C + 1, HW), lambda i: (i, 0, 0)),
            pl.BlockSpec((M, C + 1), lambda i: (0, 0)),
            pl.BlockSpec((M, 10), lambda i: (0, 0)),
            pl.BlockSpec((C, M), lambda i: (0, 0)),
            pl.BlockSpec((C + 1, C), lambda i: (0, 0)),
        ],
        out_specs=pl.BlockSpec((nb, C, HW), lambda i: (i, 0, 0)),
        compiler_params=pltpu.CompilerParams(dimension_semantics=("parallel",)),
    )(l_aug, w1_aug, wd_aug, w3f, cp)

    return out.reshape(N, C, H, W)


# ------------------------------ pure-JAX reference (NCHW) ------------------------------

def reference_forward(l, p, nl_c, nl_s):
    N, C, H, W = l.shape
    c_r = int(nl_c * C)
    M = 6 * C
    l_red = l[:, :, ::nl_s, ::nl_s]
    theta, phi, g = l[:, :c_r], l_red[:, :c_r], l_red
    f = jnp.einsum('nihw,njhw->nij', phi, g, precision=lax.Precision.HIGHEST)
    f = jnp.einsum('nij,nihw->njhw', f, theta, precision=lax.Precision.HIGHEST)
    f = f / H * W

    def bn(x, ga, be, mu, va):
        sc = ga / jnp.sqrt(va + BN_EPS)
        return (x - mu[None, :, None, None]) * sc[None, :, None, None] + be[None, :, None, None]

    dn = ('NCHW', 'OIHW', 'NCHW')
    m = lax.conv_general_dilated(f, p['w1'], (1, 1), 'VALID', dimension_numbers=dn,
                                 precision=lax.Precision.HIGHEST)
    m = jnp.clip(bn(m, p['bn1_gamma'], p['bn1_beta'], p['bn1_mean'], p['bn1_var']), 0.0, 6.0)
    m = lax.conv_general_dilated(m, p['wd'], (1, 1), ((1, 1), (1, 1)), dimension_numbers=dn,
                                 feature_group_count=M, precision=lax.Precision.HIGHEST)
    m = jnp.clip(bn(m, p['bn2_gamma'], p['bn2_beta'], p['bn2_mean'], p['bn2_var']), 0.0, 6.0)
    m = lax.conv_general_dilated(m, p['w3'], (1, 1), 'VALID', dimension_numbers=dn,
                                 precision=lax.Precision.HIGHEST)
    m = bn(m, p['bn3_gamma'], p['bn3_beta'], p['bn3_mean'], p['bn3_var'])
    return (f + m) + l


# ------------------------------------- main --------------------------------------------

if __name__ == "__main__":
    n_feature, nl_c, nl_s = 8, 0.5, 2
    N, H, W = 2, 16, 16

    key = jax.random.PRNGKey(0)
    k_x, k_p = jax.random.split(key)
    x = jax.random.normal(k_x, (N, n_feature, H, W), jnp.float32)
    params = init_params(k_p, n_feature)

    _roll_matches_jnp()   # resolve the roll convention once, outside any trace

    ref = jax.block_until_ready(reference_forward(x, params, nl_c, nl_s))

    fwd = jax.jit(bottle_nonlocal_forward, static_argnums=(2, 3, 4))

    # Default config: 2 grid steps, one batch per step (keeps both v7x TCs busy).
    out = jax.block_until_ready(fwd(x, params, nl_c, nl_s, 1))
    assert out.shape == ref.shape == (N, n_feature, H, W)
    err = float(jnp.max(jnp.abs(out - ref)))
    assert jnp.allclose(out, ref, rtol=1e-2, atol=1e-2), err

    # Batch-fused single-step config (v5e/v6e preference: amortizes per-step overhead,
    # batches stacked on the lane axis) — same kernel, validated too.
    out2 = jax.block_until_ready(fwd(x, params, nl_c, nl_s, N))
    err2 = float(jnp.max(jnp.abs(out2 - ref)))
    assert jnp.allclose(out2, ref, rtol=1e-2, atol=1e-2), err2

    print("KERNEL_OK")
</pallas_src>

<mosaic_0001>
module attributes {stable_mosaic.version = 11 : i64} {
  func.func @probe(%arg0: memref<8x128xf32, #tpu.memory_space<vmem>>, %arg1: memref<8x128xf32, #tpu.memory_space<vmem>>) attributes {dimension_semantics = [], scalar_prefetch = 0 : i64, scratch_operands = 0 : i64, tpu.core_type = #tpu.core_type<tc>} {
    %c0 = arith.constant 0 : index
    %c0_0 = arith.constant 0 : index
    %0 = vector.load %arg0[%c0, %c0_0] : memref<8x128xf32, #tpu.memory_space<vmem>>, vector<8x128xf32>
    %c1_i32 = arith.constant 1 : i32
    %1 = tpu.dynamic_rotate %0 by %c1_i32 dim 1 : vector<8x128xf32>, i32 -> vector<8x128xf32>
    %c0_1 = arith.constant 0 : index
    %c0_2 = arith.constant 0 : index
    %2 = vector.load %arg1[%c0_1, %c0_2] : memref<8x128xf32, #tpu.memory_space<vmem>>, vector<8x128xf32>
    tpu.vector_store %arg1[%c0_1, %c0_2], %1 {strides = array<i32>} : memref<8x128xf32, #tpu.memory_space<vmem>>, vector<8x128xf32>,
    return
  }
}

</mosaic_0001>

<bundles_post_ra>
// kernel: tpu_custom_call.1
= control target key start
LH: loop header
LB: loop body
LE: loop exit
PB: predicated region body
PF: predicated region fallthrough
CT: control target
= control target key end

     0   :  { %6 = vsyncpa [#allocation3], 0  ;;  %s128_s0 = inlined_call_operand.hbm [shape: f32[8,128], index: 0, kind: input, shape index: {}]   ;;  %s129_s1 = inlined_call_operand.hbm [shape: f32[8,128], index: 1, kind: output, shape index: {}]  }
   0x1   :  { %7 = vsyncpa [#allocation4], 0  ;;  %s91_s6 = smov [#allocation2]   ;;  %s43_s10 = scalar_lea.hbm %s128_s0, 128 }
   0x2   :  { %s14_s7 = sshll.u32 %s91_s6, 4  ;;  %p44_p0 = scmp.ne.s32.totalorder %s128_s0, %s43_s10  ;;  %s15_s7 = int_to_ptr.vmem [resolvable:$true] %s14_s7 }
   0x3   :  { %p47_p1 = scmp.lt.u32.totalorder %s43_s10, %s128_s0 }
   0x5   :  { %p49_p2 = pnand %p47_p1, %p44_p0 }
   0x7   :  { %52 = shalt.err (!%p49_p2)
}
   0x8   :  { %s53_s15 = scalar_lea.vmem %s15_s7, 128  ;;  %p58_p4 = scmp.lt.s32.totalorder %s15_s7, %s15_s7 }
   0x9   :  { %p54_p3 = scmp.ne.s32.totalorder %s15_s7, %s53_s15  ;;  %p59_p5 = scmp.lt.s32.totalorder %s53_s15, %s53_s15 }
   0xb   :  { %p60_p6 = por %p59_p5, %p58_p4 }
   0xd   :  { %p61_p7 = pnand %p60_p6, %p54_p3 }
   0xf   :  { %64 = shalt.err (!%p61_p7)
}
  0x10   :  { %17 = dma.hbm_to_vmem [thread:$0]  %s128_s0, 128, %s15_s7, [#allocation3]  }
  0x11   :  { %87 = dma.done.wait [#allocation3], 128  }
  0x12   :  { %88 = vsyncadd [#allocation3], 4294967168  ;;  %v21_v0 = vld [vmem:[#allocation2] sm:$0xff]  ;;  %s92_s18 = smov 1   ;;  %s93_s19 = smov [#allocation5]  }
  0x13   :  { %22 = vrot.lane.b32.xlu0 %v21_v0, %s92_s18  ;;  %s31_s20 = sshll.u32 %s93_s19, 4  ;;  %s32_s20 = int_to_ptr.vmem [resolvable:$true] %s31_s20 }
  0x14   :  { %s65_s21 = scalar_lea.vmem %s32_s20, 128  ;;  %p70_p9 = scmp.lt.s32.totalorder %s32_s20, %s32_s20 }
  0x15   :  { %p66_p8 = scmp.ne.s32.totalorder %s32_s20, %s65_s21  ;;  %p71_p10 = scmp.lt.s32.totalorder %s65_s21, %s65_s21 }
  0x17   :  { %p72_p11 = por %p71_p10, %p70_p9 }
  0x19   :  { %p73_p12 = pnand %p72_p11, %p66_p8 }
  0x85   :  { %v23_v1 = vpop.permute.xlu0 %22 }
  0x86   :  { %24 = vst [vmem:[#allocation5] sm:$0xff] %v23_v1 }
  0x87   :  { %76 = shalt.err (!%p73_p12)
}
  0x88   :  { %s77_s0 = scalar_lea.hbm %s129_s1, 128 }
  0x89   :  { %p78_p13 = scmp.ne.s32.totalorder %s129_s1, %s77_s0  ;;  %p81_p0 = scmp.lt.u32.totalorder %s77_s0, %s129_s1 }
  0x8b   :  { %p83_p1 = pnand %p81_p0, %p78_p13 }
  0x8d   :  { %86 = shalt.err (!%p83_p1)
}
  0x8e   :  { %34 = dma.vmem_to_hbm [thread:$0]  %s32_s20, 128, %s129_s1, [#allocation4]  }
  0x8f   :  { %89 = dma.done.wait [#allocation4], 128  }
  0x90   :  { %90 = vsyncadd [#allocation4], 4294967168 }
  0x91   :  { %38 = vsyncpa [#allocation3], 1 }
  0x92   :  { %39 = vsyncpa [#allocation4], 1 }

</bundles_post_ra>
